<compile_context>
chip_gen: v7x
topology: tpu7x:2x2x1
jax: 0.10.0
libtpu: 0.0.40
codegen_flags: <defaults>
</compile_context>

<pallas_src>
import jax
import jax.numpy as jnp
from jax.experimental import pallas as pl
from jax.experimental.pallas import tpu as pltpu


# -----------------------------------------------------------------------------
# Single fused Pallas kernel:
#   ReLU(Linear) x3  ->  [Linear#4 ∘ ConvT#1] (pre-fused weights) + ReLU
#   -> ConvT#2 as scalar-slab FMAs  ->  (4, N, 600) lane-dense output.
# Everything (inputs + weights + activations < 400 KB) is VMEM-resident for a
# single invocation: no grid, no pipelining, no HBM round-trips in between.
# -----------------------------------------------------------------------------
def annnet_kernel(x_ref, w1_ref, b1_ref, w2_ref, b2_ref, w3_ref, b3_ref,
                  wf_ref, bf_ref, dw2_ref, db2_ref, out_ref):
    # ----- MLP hidden layers (MXU matmuls + VPU bias/ReLU) -----
    h = jnp.maximum(
        jnp.dot(x_ref[...], w1_ref[...], preferred_element_type=jnp.float32)
        + b1_ref[...], 0.0)
    h = jnp.maximum(
        jnp.dot(h, w2_ref[...], preferred_element_type=jnp.float32)
        + b2_ref[...], 0.0)
    h = jnp.maximum(
        jnp.dot(h, w3_ref[...], preferred_element_type=jnp.float32)
        + b3_ref[...], 0.0)

    # ----- MLP layer 4 fused with decoder ConvTranspose2d(8->4, k=2, s=2) -----
    # wf_ref[co]: (hidden, 600) with columns ordered (i, j, a, b); one matmul
    # per decoder-1 output channel, then ReLU.  No activation reshape needed.
    y1 = []
    for co in range(4):
        y1.append(jnp.maximum(
            jnp.dot(h, wf_ref[co], preferred_element_type=jnp.float32)
            + bf_ref[co], 0.0))

    # ----- decoder ConvTranspose2d(4->1, k=2, s=2) -----
    # Contraction is only over co=4: 16 scalar * (N, 600) FMAs (pure VPU),
    # scalars read from SMEM.  t = a2*2 + b2 is the 2x2 output tap.
    db2 = db2_ref[0]
    for t in range(4):
        acc = y1[0] * dw2_ref[t]
        for co in range(1, 4):
            acc = acc + y1[co] * dw2_ref[co * 4 + t]
        out_ref[t] = acc + db2          # lane-dense (N, 600) store


# -----------------------------------------------------------------------------
# One-time parameter packing (NOT on the hot path).
# -----------------------------------------------------------------------------
def prepare_params(p):
    hp = jax.lax.Precision.HIGHEST
    hidden = p["w4"].shape[0]
    # w4 columns are in PyTorch reshape order (c=8, i=10, j=15).
    w4 = p["w4"].reshape(hidden, 8, 10, 15)            # (h, c, i, j)
    b4 = p["b4"].reshape(8, 10, 15)                     # (c, i, j)
    dw1 = p["dw1"]                                      # (c=8, co=4, a=2, b=2)
    db1 = p["db1"]                                      # (co=4,)
    # Fold Linear#4 into decoder-1 (both linear, no ReLU in between):
    #   y1[n, co, (i,j,a,b)] = sum_c (h@w4 + b4)[n, (c,i,j)] * dw1[c,co,a,b] + db1[co]
    wf = jnp.einsum("hcij,ckab->khijab", w4, dw1, precision=hp)
    wf = wf.reshape(4, hidden, 600)                     # per-co (hidden, (i,j,a,b))
    bf = jnp.einsum("cij,ckab->kijab", b4, dw1, precision=hp)
    bf = bf + db1[:, None, None, None, None]
    bf = bf.reshape(4, 1, 600)
    return {
        "w1": p["w1"], "b1": p["b1"],
        "w2": p["w2"], "b2": p["b2"],
        "w3": p["w3"], "b3": p["b3"],
        "wf": wf, "bf": bf,
        "dw2": p["dw2"].reshape(16),                    # (co, 0, a2, b2) flat
        "db2": p["db2"].reshape(1),
    }


# -----------------------------------------------------------------------------
# ANNNet forward: one pallas_call + trivial un-scatter to NCHW in the wrapper.
# -----------------------------------------------------------------------------
@jax.jit
def annnet_forward(data, pp):
    n = data.shape[0]
    vmem = pl.BlockSpec(memory_space=pltpu.MemorySpace.VMEM)
    smem = pl.BlockSpec(memory_space=pltpu.MemorySpace.SMEM)
    out = pl.pallas_call(
        annnet_kernel,
        out_shape=jax.ShapeDtypeStruct((4, n, 600), jnp.float32),
        in_specs=[vmem] * 9 + [smem, smem],
        out_specs=vmem,
    )(data, pp["w1"], pp["b1"], pp["w2"], pp["b2"], pp["w3"], pp["b3"],
      pp["wf"], pp["bf"], pp["dw2"], pp["db2"])
    # out[t, n, (i,j,a,b)] with t = a2*2 + b2  ->  image[n, 0, 4i+2a+a2, 4j+2b+b2]
    o = out.reshape(2, 2, n, 10, 15, 2, 2)              # (a2, b2, n, i, j, a, b)
    img = jnp.transpose(o, (2, 3, 5, 0, 4, 6, 1))       # (n, i, a, a2, j, b, b2)
    return img.reshape(n, 1, 40, 60)


# -----------------------------------------------------------------------------
# Pure-JAX reference (un-fused), for a correctness check in __main__.
# -----------------------------------------------------------------------------
def reference_forward(data, p):
    hp = jax.lax.Precision.HIGHEST
    h = jax.nn.relu(jnp.dot(data, p["w1"], precision=hp) + p["b1"])
    h = jax.nn.relu(jnp.dot(h, p["w2"], precision=hp) + p["b2"])
    h = jax.nn.relu(jnp.dot(h, p["w3"], precision=hp) + p["b3"])
    z = jnp.dot(h, p["w4"], precision=hp) + p["b4"]
    n = z.shape[0]
    x4 = z.reshape(n, 8, 10, 15)
    y = jnp.einsum("ncij,ckab->nkiajb", x4, p["dw1"], precision=hp)
    y = jax.nn.relu(y + p["db1"][None, :, None, None, None, None]).reshape(n, 4, 20, 30)
    img = jnp.einsum("ncij,ckab->nkiajb", y, p["dw2"], precision=hp)
    img = img + p["db2"][None, :, None, None, None, None]
    return img.reshape(n, 1, 40, 60)


if __name__ == "__main__":
    N = 2
    input_dim, hidden_dim = 16, 32
    output_dim = 8 * 10 * 15  # 1200, fixed by the reshape in forward()

    key = jax.random.PRNGKey(0)
    ks = jax.random.split(key, 13)

    def init(k, shape, scale=0.1):
        return jax.random.normal(k, shape, dtype=jnp.float32) * scale

    raw_params = {
        # nn.Linear weights stored pre-transposed as (in, out); bias as (1, out).
        "w1": init(ks[0], (input_dim, hidden_dim)),
        "b1": init(ks[1], (1, hidden_dim)),
        "w2": init(ks[2], (hidden_dim, hidden_dim)),
        "b2": init(ks[3], (1, hidden_dim)),
        "w3": init(ks[4], (hidden_dim, hidden_dim)),
        "b3": init(ks[5], (1, hidden_dim)),
        "w4": init(ks[6], (hidden_dim, output_dim)),
        "b4": init(ks[7], (1, output_dim)),
        # TODO(synk): Coder.decoder is not defined in ConvANN.py; substituted a
        # synthetic 2-layer ConvTranspose2d(8->4->1, k=2, s=2) decoder mapping
        # (8,10,15) -> (1,40,60), matching the shapes implied by the forward.
        "dw1": init(ks[8], (8, 4, 2, 2)),    # PyTorch (C_in, C_out, kH, kW)
        "db1": init(ks[9], (4,)),
        "dw2": init(ks[10], (4, 1, 2, 2)),
        "db2": init(ks[11], (1,)),
    }

    data = jax.random.normal(ks[12], (N, input_dim), dtype=jnp.float32)

    pp = prepare_params(raw_params)          # one-time packing, off the hot path
    img = jax.block_until_ready(annnet_forward(data, pp))

    assert img.shape == (N, 1, 40, 60), img.shape
    assert img.dtype == jnp.float32

    ref = jax.block_until_ready(reference_forward(data, raw_params))
    max_err = float(jnp.max(jnp.abs(img - ref)))
    assert max_err < 1e-4, f"mismatch vs reference: max abs err = {max_err}"

    print("KERNEL_OK")
</pallas_src>

<mosaic_0001>
module attributes {stable_mosaic.version = 11 : i64} {
  func.func @annnet_kernel(%arg0: memref<2x16xf32, #tpu.memory_space<vmem>>, %arg1: memref<16x32xf32, #tpu.memory_space<vmem>>, %arg2: memref<1x32xf32, #tpu.memory_space<vmem>>, %arg3: memref<32x32xf32, #tpu.memory_space<vmem>>, %arg4: memref<1x32xf32, #tpu.memory_space<vmem>>, %arg5: memref<32x32xf32, #tpu.memory_space<vmem>>, %arg6: memref<1x32xf32, #tpu.memory_space<vmem>>, %arg7: memref<4x32x600xf32, #tpu.memory_space<vmem>>, %arg8: memref<4x1x600xf32, #tpu.memory_space<vmem>>, %arg9: memref<16xf32, #tpu.memory_space<smem>>, %arg10: memref<1xf32, #tpu.memory_space<smem>>, %arg11: memref<4x2x600xf32, #tpu.memory_space<vmem>>) attributes {dimension_semantics = [], scalar_prefetch = 0 : i64, scratch_operands = 0 : i64, tpu.core_type = #tpu.core_type<tc>} {
    %c0 = arith.constant 0 : index
    %c0_0 = arith.constant 0 : index
    %0 = vector.load %arg0[%c0, %c0_0] : memref<2x16xf32, #tpu.memory_space<vmem>>, vector<2x16xf32>
    %c0_1 = arith.constant 0 : index
    %c0_2 = arith.constant 0 : index
    %1 = vector.load %arg1[%c0_1, %c0_2] : memref<16x32xf32, #tpu.memory_space<vmem>>, vector<16x32xf32>
    %cst = arith.constant dense<0.000000e+00> : vector<2x32xf32>
    %2 = tpu.matmul %0, %1, %cst {dimension_numbers = #tpu.dot_dimension_numbers<[1], [0], [0], [1], [0, 0, 1, 1], [], []>} : vector<2x16xf32>, vector<16x32xf32>, vector<2x32xf32> -> vector<2x32xf32>
    %c0_3 = arith.constant 0 : index
    %c0_4 = arith.constant 0 : index
    %3 = vector.load %arg2[%c0_3, %c0_4] : memref<1x32xf32, #tpu.memory_space<vmem>>, vector<1x32xf32>
    %4 = vector.broadcast %3 : vector<1x32xf32> to vector<2x32xf32>
    %5 = arith.addf %2, %4 : vector<2x32xf32>
    %cst_5 = arith.constant 0.000000e+00 : f32
    %6 = vector.broadcast %cst_5 : f32 to vector<2x32xf32>
    %7 = arith.maximumf %5, %6 : vector<2x32xf32>
    %c0_6 = arith.constant 0 : index
    %c0_7 = arith.constant 0 : index
    %8 = vector.load %arg3[%c0_6, %c0_7] : memref<32x32xf32, #tpu.memory_space<vmem>>, vector<32x32xf32>
    %cst_8 = arith.constant dense<0.000000e+00> : vector<2x32xf32>
    %9 = tpu.matmul %7, %8, %cst_8 {dimension_numbers = #tpu.dot_dimension_numbers<[1], [0], [0], [1], [0, 0, 1, 1], [], []>} : vector<2x32xf32>, vector<32x32xf32>, vector<2x32xf32> -> vector<2x32xf32>
    %c0_9 = arith.constant 0 : index
    %c0_10 = arith.constant 0 : index
    %10 = vector.load %arg4[%c0_9, %c0_10] : memref<1x32xf32, #tpu.memory_space<vmem>>, vector<1x32xf32>
    %11 = vector.broadcast %10 : vector<1x32xf32> to vector<2x32xf32>
    %12 = arith.addf %9, %11 : vector<2x32xf32>
    %cst_11 = arith.constant 0.000000e+00 : f32
    %13 = vector.broadcast %cst_11 : f32 to vector<2x32xf32>
    %14 = arith.maximumf %12, %13 : vector<2x32xf32>
    %c0_12 = arith.constant 0 : index
    %c0_13 = arith.constant 0 : index
    %15 = vector.load %arg5[%c0_12, %c0_13] : memref<32x32xf32, #tpu.memory_space<vmem>>, vector<32x32xf32>
    %cst_14 = arith.constant dense<0.000000e+00> : vector<2x32xf32>
    %16 = tpu.matmul %14, %15, %cst_14 {dimension_numbers = #tpu.dot_dimension_numbers<[1], [0], [0], [1], [0, 0, 1, 1], [], []>} : vector<2x32xf32>, vector<32x32xf32>, vector<2x32xf32> -> vector<2x32xf32>
    %c0_15 = arith.constant 0 : index
    %c0_16 = arith.constant 0 : index
    %17 = vector.load %arg6[%c0_15, %c0_16] : memref<1x32xf32, #tpu.memory_space<vmem>>, vector<1x32xf32>
    %18 = vector.broadcast %17 : vector<1x32xf32> to vector<2x32xf32>
    %19 = arith.addf %16, %18 : vector<2x32xf32>
    %cst_17 = arith.constant 0.000000e+00 : f32
    %20 = vector.broadcast %cst_17 : f32 to vector<2x32xf32>
    %21 = arith.maximumf %19, %20 : vector<2x32xf32>
    %c0_18 = arith.constant 0 : index
    %c0_19 = arith.constant 0 : index
    %c0_20 = arith.constant 0 : index
    %22 = vector.load %arg7[%c0_18, %c0_19, %c0_20] : memref<4x32x600xf32, #tpu.memory_space<vmem>>, vector<1x32x600xf32>
    %23 = vector.shape_cast %22 : vector<1x32x600xf32> to vector<32x600xf32>
    %cst_21 = arith.constant dense<0.000000e+00> : vector<2x600xf32>
    %24 = tpu.matmul %21, %23, %cst_21 {dimension_numbers = #tpu.dot_dimension_numbers<[1], [0], [0], [1], [0, 0, 1, 1], [], []>} : vector<2x32xf32>, vector<32x600xf32>, vector<2x600xf32> -> vector<2x600xf32>
    %c0_22 = arith.constant 0 : index
    %c0_23 = arith.constant 0 : index
    %c0_24 = arith.constant 0 : index
    %25 = vector.load %arg8[%c0_22, %c0_23, %c0_24] : memref<4x1x600xf32, #tpu.memory_space<vmem>>, vector<1x1x600xf32>
    %26 = vector.shape_cast %25 : vector<1x1x600xf32> to vector<1x600xf32>
    %27 = vector.broadcast %26 : vector<1x600xf32> to vector<2x600xf32>
    %28 = arith.addf %24, %27 : vector<2x600xf32>
    %cst_25 = arith.constant 0.000000e+00 : f32
    %29 = vector.broadcast %cst_25 : f32 to vector<2x600xf32>
    %30 = arith.maximumf %28, %29 : vector<2x600xf32>
    %c1 = arith.constant 1 : index
    %c0_26 = arith.constant 0 : index
    %c0_27 = arith.constant 0 : index
    %31 = vector.load %arg7[%c1, %c0_26, %c0_27] : memref<4x32x600xf32, #tpu.memory_space<vmem>>, vector<1x32x600xf32>
    %32 = vector.shape_cast %31 : vector<1x32x600xf32> to vector<32x600xf32>
    %cst_28 = arith.constant dense<0.000000e+00> : vector<2x600xf32>
    %33 = tpu.matmul %21, %32, %cst_28 {dimension_numbers = #tpu.dot_dimension_numbers<[1], [0], [0], [1], [0, 0, 1, 1], [], []>} : vector<2x32xf32>, vector<32x600xf32>, vector<2x600xf32> -> vector<2x600xf32>
    %c1_29 = arith.constant 1 : index
    %c0_30 = arith.constant 0 : index
    %c0_31 = arith.constant 0 : index
    %34 = vector.load %arg8[%c1_29, %c0_30, %c0_31] : memref<4x1x600xf32, #tpu.memory_space<vmem>>, vector<1x1x600xf32>
    %35 = vector.shape_cast %34 : vector<1x1x600xf32> to vector<1x600xf32>
    %36 = vector.broadcast %35 : vector<1x600xf32> to vector<2x600xf32>
    %37 = arith.addf %33, %36 : vector<2x600xf32>
    %cst_32 = arith.constant 0.000000e+00 : f32
    %38 = vector.broadcast %cst_32 : f32 to vector<2x600xf32>
    %39 = arith.maximumf %37, %38 : vector<2x600xf32>
    %c2 = arith.constant 2 : index
    %c0_33 = arith.constant 0 : index
    %c0_34 = arith.constant 0 : index
    %40 = vector.load %arg7[%c2, %c0_33, %c0_34] : memref<4x32x600xf32, #tpu.memory_space<vmem>>, vector<1x32x600xf32>
    %41 = vector.shape_cast %40 : vector<1x32x600xf32> to vector<32x600xf32>
    %cst_35 = arith.constant dense<0.000000e+00> : vector<2x600xf32>
    %42 = tpu.matmul %21, %41, %cst_35 {dimension_numbers = #tpu.dot_dimension_numbers<[1], [0], [0], [1], [0, 0, 1, 1], [], []>} : vector<2x32xf32>, vector<32x600xf32>, vector<2x600xf32> -> vector<2x600xf32>
    %c2_36 = arith.constant 2 : index
    %c0_37 = arith.constant 0 : index
    %c0_38 = arith.constant 0 : index
    %43 = vector.load %arg8[%c2_36, %c0_37, %c0_38] : memref<4x1x600xf32, #tpu.memory_space<vmem>>, vector<1x1x600xf32>
    %44 = vector.shape_cast %43 : vector<1x1x600xf32> to vector<1x600xf32>
    %45 = vector.broadcast %44 : vector<1x600xf32> to vector<2x600xf32>
    %46 = arith.addf %42, %45 : vector<2x600xf32>
    %cst_39 = arith.constant 0.000000e+00 : f32
    %47 = vector.broadcast %cst_39 : f32 to vector<2x600xf32>
    %48 = arith.maximumf %46, %47 : vector<2x600xf32>
    %c3 = arith.constant 3 : index
    %c0_40 = arith.constant 0 : index
    %c0_41 = arith.constant 0 : index
    %49 = vector.load %arg7[%c3, %c0_40, %c0_41] : memref<4x32x600xf32, #tpu.memory_space<vmem>>, vector<1x32x600xf32>
    %50 = vector.shape_cast %49 : vector<1x32x600xf32> to vector<32x600xf32>
    %cst_42 = arith.constant dense<0.000000e+00> : vector<2x600xf32>
    %51 = tpu.matmul %21, %50, %cst_42 {dimension_numbers = #tpu.dot_dimension_numbers<[1], [0], [0], [1], [0, 0, 1, 1], [], []>} : vector<2x32xf32>, vector<32x600xf32>, vector<2x600xf32> -> vector<2x600xf32>
    %c3_43 = arith.constant 3 : index
    %c0_44 = arith.constant 0 : index
    %c0_45 = arith.constant 0 : index
    %52 = vector.load %arg8[%c3_43, %c0_44, %c0_45] : memref<4x1x600xf32, #tpu.memory_space<vmem>>, vector<1x1x600xf32>
    %53 = vector.shape_cast %52 : vector<1x1x600xf32> to vector<1x600xf32>
    %54 = vector.broadcast %53 : vector<1x600xf32> to vector<2x600xf32>
    %55 = arith.addf %51, %54 : vector<2x600xf32>
    %cst_46 = arith.constant 0.000000e+00 : f32
    %56 = vector.broadcast %cst_46 : f32 to vector<2x600xf32>
    %57 = arith.maximumf %55, %56 : vector<2x600xf32>
    %c0_47 = arith.constant 0 : index
    %58 = memref.load %arg10[%c0_47] : memref<1xf32, #tpu.memory_space<smem>>
    %c0_48 = arith.constant 0 : index
    %59 = memref.load %arg9[%c0_48] : memref<16xf32, #tpu.memory_space<smem>>
    %60 = vector.broadcast %59 : f32 to vector<2x600xf32>
    %61 = arith.mulf %30, %60 : vector<2x600xf32>
    %c4 = arith.constant 4 : index
    %62 = memref.load %arg9[%c4] : memref<16xf32, #tpu.memory_space<smem>>
    %63 = vector.broadcast %62 : f32 to vector<2x600xf32>
    %64 = arith.mulf %39, %63 : vector<2x600xf32>
    %65 = arith.addf %61, %64 : vector<2x600xf32>
    %c8 = arith.constant 8 : index
    %66 = memref.load %arg9[%c8] : memref<16xf32, #tpu.memory_space<smem>>
    %67 = vector.broadcast %66 : f32 to vector<2x600xf32>
    %68 = arith.mulf %48, %67 : vector<2x600xf32>
    %69 = arith.addf %65, %68 : vector<2x600xf32>
    %c12 = arith.constant 12 : index
    %70 = memref.load %arg9[%c12] : memref<16xf32, #tpu.memory_space<smem>>
    %71 = vector.broadcast %70 : f32 to vector<2x600xf32>
    %72 = arith.mulf %57, %71 : vector<2x600xf32>
    %73 = arith.addf %69, %72 : vector<2x600xf32>
    %74 = vector.broadcast %58 : f32 to vector<2x600xf32>
    %75 = arith.addf %73, %74 : vector<2x600xf32>
    %c0_49 = arith.constant 0 : index
    %c0_50 = arith.constant 0 : index
    %c0_51 = arith.constant 0 : index
    %76 = vector.load %arg11[%c0_49, %c0_50, %c0_51] : memref<4x2x600xf32, #tpu.memory_space<vmem>>, vector<1x2x600xf32>
    %77 = vector.shape_cast %76 : vector<1x2x600xf32> to vector<2x600xf32>
    %78 = vector.shape_cast %75 : vector<2x600xf32> to vector<1x2x600xf32>
    tpu.vector_store %arg11[%c0_49, %c0_50, %c0_51], %78 {strides = array<i32>} : memref<4x2x600xf32, #tpu.memory_space<vmem>>, vector<1x2x600xf32>,
    %c1_52 = arith.constant 1 : index
    %79 = memref.load %arg9[%c1_52] : memref<16xf32, #tpu.memory_space<smem>>
    %80 = vector.broadcast %79 : f32 to vector<2x600xf32>
    %81 = arith.mulf %30, %80 : vector<2x600xf32>
    %c5 = arith.constant 5 : index
    %82 = memref.load %arg9[%c5] : memref<16xf32, #tpu.memory_space<smem>>
    %83 = vector.broadcast %82 : f32 to vector<2x600xf32>
    %84 = arith.mulf %39, %83 : vector<2x600xf32>
    %85 = arith.addf %81, %84 : vector<2x600xf32>
    %c9 = arith.constant 9 : index
    %86 = memref.load %arg9[%c9] : memref<16xf32, #tpu.memory_space<smem>>
    %87 = vector.broadcast %86 : f32 to vector<2x600xf32>
    %88 = arith.mulf %48, %87 : vector<2x600xf32>
    %89 = arith.addf %85, %88 : vector<2x600xf32>
    %c13 = arith.constant 13 : index
    %90 = memref.load %arg9[%c13] : memref<16xf32, #tpu.memory_space<smem>>
    %91 = vector.broadcast %90 : f32 to vector<2x600xf32>
    %92 = arith.mulf %57, %91 : vector<2x600xf32>
    %93 = arith.addf %89, %92 : vector<2x600xf32>
    %94 = vector.broadcast %58 : f32 to vector<2x600xf32>
    %95 = arith.addf %93, %94 : vector<2x600xf32>
    %c1_53 = arith.constant 1 : index
    %c0_54 = arith.constant 0 : index
    %c0_55 = arith.constant 0 : index
    %96 = vector.load %arg11[%c1_53, %c0_54, %c0_55] : memref<4x2x600xf32, #tpu.memory_space<vmem>>, vector<1x2x600xf32>
    %97 = vector.shape_cast %96 : vector<1x2x600xf32> to vector<2x600xf32>
    %98 = vector.shape_cast %95 : vector<2x600xf32> to vector<1x2x600xf32>
    tpu.vector_store %arg11[%c1_53, %c0_54, %c0_55], %98 {strides = array<i32>} : memref<4x2x600xf32, #tpu.memory_space<vmem>>, vector<1x2x600xf32>,
    %c2_56 = arith.constant 2 : index
    %99 = memref.load %arg9[%c2_56] : memref<16xf32, #tpu.memory_space<smem>>
    %100 = vector.broadcast %99 : f32 to vector<2x600xf32>
    %101 = arith.mulf %30, %100 : vector<2x600xf32>
    %c6 = arith.constant 6 : index
    %102 = memref.load %arg9[%c6] : memref<16xf32, #tpu.memory_space<smem>>
    %103 = vector.broadcast %102 : f32 to vector<2x600xf32>
    %104 = arith.mulf %39, %103 : vector<2x600xf32>
    %105 = arith.addf %101, %104 : vector<2x600xf32>
    %c10 = arith.constant 10 : index
    %106 = memref.load %arg9[%c10] : memref<16xf32, #tpu.memory_space<smem>>
    %107 = vector.broadcast %106 : f32 to vector<2x600xf32>
    %108 = arith.mulf %48, %107 : vector<2x600xf32>
    %109 = arith.addf %105, %108 : vector<2x600xf32>
    %c14 = arith.constant 14 : index
    %110 = memref.load %arg9[%c14] : memref<16xf32, #tpu.memory_space<smem>>
    %111 = vector.broadcast %110 : f32 to vector<2x600xf32>
    %112 = arith.mulf %57, %111 : vector<2x600xf32>
    %113 = arith.addf %109, %112 : vector<2x600xf32>
    %114 = vector.broadcast %58 : f32 to vector<2x600xf32>
    %115 = arith.addf %113, %114 : vector<2x600xf32>
    %c2_57 = arith.constant 2 : index
    %c0_58 = arith.constant 0 : index
    %c0_59 = arith.constant 0 : index
    %116 = vector.load %arg11[%c2_57, %c0_58, %c0_59] : memref<4x2x600xf32, #tpu.memory_space<vmem>>, vector<1x2x600xf32>
    %117 = vector.shape_cast %116 : vector<1x2x600xf32> to vector<2x600xf32>
    %118 = vector.shape_cast %115 : vector<2x600xf32> to vector<1x2x600xf32>
    tpu.vector_store %arg11[%c2_57, %c0_58, %c0_59], %118 {strides = array<i32>} : memref<4x2x600xf32, #tpu.memory_space<vmem>>, vector<1x2x600xf32>,
    %c3_60 = arith.constant 3 : index
    %119 = memref.load %arg9[%c3_60] : memref<16xf32, #tpu.memory_space<smem>>
    %120 = vector.broadcast %119 : f32 to vector<2x600xf32>
    %121 = arith.mulf %30, %120 : vector<2x600xf32>
    %c7 = arith.constant 7 : index
    %122 = memref.load %arg9[%c7] : memref<16xf32, #tpu.memory_space<smem>>
    %123 = vector.broadcast %122 : f32 to vector<2x600xf32>
    %124 = arith.mulf %39, %123 : vector<2x600xf32>
    %125 = arith.addf %121, %124 : vector<2x600xf32>
    %c11 = arith.constant 11 : index
    %126 = memref.load %arg9[%c11] : memref<16xf32, #tpu.memory_space<smem>>
    %127 = vector.broadcast %126 : f32 to vector<2x600xf32>
    %128 = arith.mulf %48, %127 : vector<2x600xf32>
    %129 = arith.addf %125, %128 : vector<2x600xf32>
    %c15 = arith.constant 15 : index
    %130 = memref.load %arg9[%c15] : memref<16xf32, #tpu.memory_space<smem>>
    %131 = vector.broadcast %130 : f32 to vector<2x600xf32>
    %132 = arith.mulf %57, %131 : vector<2x600xf32>
    %133 = arith.addf %129, %132 : vector<2x600xf32>
    %134 = vector.broadcast %58 : f32 to vector<2x600xf32>
    %135 = arith.addf %133, %134 : vector<2x600xf32>
    %c3_61 = arith.constant 3 : index
    %c0_62 = arith.constant 0 : index
    %c0_63 = arith.constant 0 : index
    %136 = vector.load %arg11[%c3_61, %c0_62, %c0_63] : memref<4x2x600xf32, #tpu.memory_space<vmem>>, vector<1x2x600xf32>
    %137 = vector.shape_cast %136 : vector<1x2x600xf32> to vector<2x600xf32>
    %138 = vector.shape_cast %135 : vector<2x600xf32> to vector<1x2x600xf32>
    tpu.vector_store %arg11[%c3_61, %c0_62, %c0_63], %138 {strides = array<i32>} : memref<4x2x600xf32, #tpu.memory_space<vmem>>, vector<1x2x600xf32>,
    return
  }
}

</mosaic_0001>

<bundles_post_ra>
// kernel: annnet_forward.1
= control target key start
LH: loop header
LB: loop body
LE: loop exit
PB: predicated region body
PF: predicated region fallthrough
CT: control target
= control target key end

     0   :  { %17 = vsyncpa [#allocation4], 0  ;;  %s2926_s0 = inlined_call_operand.hbm [shape: f32[2,16], index: 0, kind: input, shape index: {}]   ;;  %s2927_s1 = inlined_call_operand.hbm [shape: f32[16,32], index: 1, kind: input, shape index: {}]   ;;  %s2928_s2 = inlined_call_operand.hbm [shape: f32[1,32], index: 2, kind: input, shape index: {}]   ;;  %s2929_s3 = inlined_call_operand.hbm [shape: f32[32,32], index: 3, kind: input, shape index: {}]   ;;  %s2930_s4 = inlined_call_operand.hbm [shape: f32[1,32], index: 4, kind: input, shape index: {}]   ;;  %s2931_s5 = inlined_call_operand.hbm [shape: f32[32,32], index: 5, kind: input, shape index: {}]   ;;  %s2932_s6 = inlined_call_operand.hbm [shape: f32[1,32], index: 6, kind: input, shape index: {}]   ;;  %s2933_s7 = inlined_call_operand.hbm [shape: f32[4,32,600], index: 7, kind: input, shape index: {}]   ;;  %s2934_s8 = inlined_call_operand.hbm [shape: f32[4,1,600], index: 8, kind: input, shape index: {}]   ;;  %s2935_s9 = inlined_call_operand.hbm [shape: f32[16], index: 9, kind: input, shape index: {}]   ;;  %s2936_s10 = inlined_call_operand.<no memory space> [shape: f32[1], index: 10, kind: input, shape index: {}]   ;;  %s2937_s11 = inlined_call_operand.vmem [shape: f32[4,2,600], index: 11, kind: output, shape index: {}]  }
   0x1   :  { %18 = vsyncpa [#allocation7], 0 }
   0x2   :  { %19 = vsyncpa [#allocation10], 0 }
   0x3   :  { %20 = vsyncpa [#allocation13], 0 }
   0x4   :  { %21 = vsyncpa [#allocation16], 0 }
   0x5   :  { %22 = vsyncpa [#allocation5], 0  ;;  %s2313_s17 = smov [#allocation6]   ;;  %s2093_s21 = scalar_lea.hbm %s2927_s1, 256 }
   0x6   :  { %s38_s18 = sshll.u32 %s2313_s17, 4  ;;  %p2094_p0 = scmp.ne.s32.totalorder %s2927_s1, %s2093_s21  ;;  %s39_s18 = int_to_ptr.vmem [resolvable:$true] %s38_s18 }
   0x7   :  { %p2097_p1 = scmp.lt.u32.totalorder %s2093_s21, %s2927_s1 }
   0x9   :  { %p2099_p2 = pnand %p2097_p1, %p2094_p0 }
   0xb   :  { %2102 = shalt.err (!%p2099_p2)
}
   0xc   :  { %s2103_s26 = scalar_lea.vmem %s39_s18, 256  ;;  %p2108_p4 = scmp.lt.s32.totalorder %s39_s18, %s39_s18 }
   0xd   :  { %p2104_p3 = scmp.ne.s32.totalorder %s39_s18, %s2103_s26  ;;  %p2109_p5 = scmp.lt.s32.totalorder %s2103_s26, %s2103_s26 }
   0xf   :  { %p2110_p6 = por %p2109_p5, %p2108_p4 }
  0x11   :  { %p2111_p7 = pnand %p2110_p6, %p2104_p3 }
  0x13   :  { %2114 = shalt.err (!%p2111_p7)
}
  0x14   :  { %s2314_s27 = smov 128   ;;  %s2315_s28 = smov 8  }
  0x15   :  { %44 = dma.hbm_to_vmem [thread:$0]  %s2927_s1, 256, %s39_s18, [#allocation7], %s2314_s27, %s2314_s27, %s2315_s28  }
  0x16   :  { %s2316_s12 = smov [#allocation9]   ;;  %s2317_s14 = smov [#allocation12]  }
  0x17   :  { %s60_s13 = sshll.u32 %s2316_s12, 4  ;;  %s82_s15 = sshll.u32 %s2317_s14, 4  ;;  %s61_s13 = int_to_ptr.vmem [resolvable:$true] %s60_s13  ;;  %s83_s15 = int_to_ptr.vmem [resolvable:$true] %s82_s15 }
  0x18   :  { %s2115_s19 = scalar_lea.hbm %s2929_s3, 512 }
  0x19   :  { %p2116_p8 = scmp.ne.s32.totalorder %s2929_s3, %s2115_s19  ;;  %p2119_p9 = scmp.lt.u32.totalorder %s2115_s19, %s2929_s3 }
  0x1b   :  { %p2121_p10 = pnand %p2119_p9, %p2116_p8 }
  0x1d   :  { %2124 = shalt.err (!%p2121_p10)
}
  0x1e   :  { %s2125_s1 = scalar_lea.vmem %s61_s13, 512  ;;  %p2130_p12 = scmp.lt.s32.totalorder %s61_s13, %s61_s13 }
  0x1f   :  { %p2126_p11 = scmp.ne.s32.totalorder %s61_s13, %s2125_s1  ;;  %p2131_p13 = scmp.lt.s32.totalorder %s2125_s1, %s2125_s1 }
  0x21   :  { %p2132_p0 = por %p2131_p13, %p2130_p12 }
  0x23   :  { %p2133_p1 = pnand %p2132_p0, %p2126_p11 }
  0x25   :  { %2136 = shalt.err (!%p2133_p1)
}
  0x26   :  { %66 = dma.hbm_to_vmem [thread:$0]  %s2929_s3, 512, %s61_s13, [#allocation10], %s2314_s27, %s2314_s27, %s2315_s28  }
  0x27   :  { %s2137_s29 = scalar_lea.hbm %s2931_s5, 512 }
  0x28   :  { %p2138_p2 = scmp.ne.s32.totalorder %s2931_s5, %s2137_s29  ;;  %p2141_p3 = scmp.lt.u32.totalorder %s2137_s29, %s2931_s5 }
  0x2a   :  { %p2143_p4 = pnand %p2141_p3, %p2138_p2 }
  0x2c   :  { %2146 = shalt.err (!%p2143_p4)
}
  0x2d   :  { %s2147_s17 = scalar_lea.vmem %s83_s15, 512  ;;  %p2152_p6 = scmp.lt.s32.totalorder %s83_s15, %s83_s15 }
  0x2e   :  { %p2148_p5 = scmp.ne.s32.totalorder %s83_s15, %s2147_s17  ;;  %p2153_p7 = scmp.lt.s32.totalorder %s2147_s17, %s2147_s17 }
  0x30   :  { %p2154_p8 = por %p2153_p7, %p2152_p6 }
  0x32   :  { %p2155_p9 = pnand %p2154_p8, %p2148_p5 }
  0x34   :  { %2158 = shalt.err (!%p2155_p9)
}
  0x35   :  { %88 = dma.hbm_to_vmem [thread:$0]  %s2931_s5, 512, %s83_s15, [#allocation13], %s2314_s27, %s2314_s27, %s2315_s28  }
  0x36   :  { %s2318_s19 = smov [#allocation15]   ;;  %s2159_s23 = scalar_lea.hbm %s2933_s7, 10240 }
  0x37   :  { %s104_s20 = sshll.u32 %s2318_s19, 4  ;;  %p2160_p10 = scmp.ne.s32.totalorder %s2933_s7, %s2159_s23  ;;  %s105_s20 = int_to_ptr.vmem [resolvable:$true] %s104_s20 }
  0x38   :  { %p2163_p11 = scmp.lt.u32.totalorder %s2159_s23, %s2933_s7 }
  0x3a   :  { %p2165_p12 = pnand %p2163_p11, %p2160_p10 }
  0x3c   :  { %2168 = shalt.err (!%p2165_p12)
}
  0x3d   :  { %s2169_s26 = scalar_lea.vmem %s105_s20, 10240  ;;  %p2174_p0 = scmp.lt.s32.totalorder %s105_s20, %s105_s20 }
  0x3e   :  { %p2170_p13 = scmp.ne.s32.totalorder %s105_s20, %s2169_s26  ;;  %p2175_p1 = scmp.lt.s32.totalorder %s2169_s26, %s2169_s26 }
  0x40   :  { %p2176_p2 = por %p2175_p1, %p2174_p0 }
  0x42   :  { %p2177_p3 = pnand %p2176_p2, %p2170_p13 }
  0x44   :  { %2180 = shalt.err (!%p2177_p3)
}
  0x45   :  { %s2319_s5 = smov 640   ;;  %s2320_s27 = smov 40  }
  0x46   :  { %110 = dma.hbm_to_vmem [thread:$0]  %s2933_s7, 10240, %s105_s20, [#allocation16], %s2319_s5, %s2319_s5, %s2320_s27  }
  0x47   :  { %s2321_s29 = smov [#allocation3]   ;;  %s2322_s12 = smov [#allocation8]  }
  0x48   :  { %s29_s30 = sshll.u32 %s2321_s29, 4  ;;  %s51_s14 = sshll.u32 %s2322_s12, 4  ;;  %s30_s30 = int_to_ptr.vmem [resolvable:$true] %s29_s30  ;;  %s52_s14 = int_to_ptr.vmem [resolvable:$true] %s51_s14 }
  0x49   :  { %s2181_s3 = scalar_lea.hbm %s2926_s0, 32 }
  0x4a   :  { %p2182_p4 = scmp.ne.s32.totalorder %s2926_s0, %s2181_s3  ;;  %p2185_p5 = scmp.lt.u32.totalorder %s2181_s3, %s2926_s0 }
  0x4c   :  { %p2187_p6 = pnand %p2185_p5, %p2182_p4 }
  0x4e   :  { %2190 = shalt.err (!%p2187_p6)
}
  0x4f   :  { %s2191_s7 = scalar_lea.vmem %s30_s30, 32  ;;  %p2196_p8 = scmp.lt.s32.totalorder %s30_s30, %s30_s30 }
  0x50   :  { %p2192_p7 = scmp.ne.s32.totalorder %s30_s30, %s2191_s7  ;;  %p2197_p9 = scmp.lt.s32.totalorder %s2191_s7, %s2191_s7 }
  0x52   :  { %p2198_p10 = por %p2197_p9, %p2196_p8 }
  0x54   :  { %p2199_p11 = pnand %p2198_p10, %p2192_p7 }
  0x56   :  { %2202 = shalt.err (!%p2199_p11)
}
  0x57   :  { %32 = dma.hbm_to_vmem [thread:$0]  %s2926_s0, 32, %s30_s30, [#allocation4]  }
  0x58   :  { %s2203_s24 = scalar_lea.hbm %s2928_s2, 16 }
  0x59   :  { %p2204_p12 = scmp.ne.s32.totalorder %s2928_s2, %s2203_s24  ;;  %p2207_p13 = scmp.lt.u32.totalorder %s2203_s24, %s2928_s2 }
  0x5b   :  { %p2209_p0 = pnand %p2207_p13, %p2204_p12 }
  0x5d   :  { %2212 = shalt.err (!%p2209_p0)
}
  0x5e   :  { %s2213_s28 = scalar_lea.vmem %s52_s14, 16  ;;  %s2217_s15 = scalar_lea.vmem %s52_s14, 32 }
  0x5f   :  { %p2214_p1 = scmp.ne.s32.totalorder %s52_s14, %s2213_s28  ;;  %p2218_p2 = scmp.lt.s32.totalorder %s52_s14, %s52_s14 }
  0x60   :  { %p2219_p3 = scmp.lt.s32.totalorder %s2217_s15, %s2213_s28 }
  0x62   :  { %p2220_p4 = por %p2219_p3, %p2218_p2 }
  0x64   :  { %p2221_p5 = pnand %p2220_p4, %p2214_p1 }
  0x66   :  { %2224 = shalt.err (!%p2221_p5)
}
  0x67   :  { %54 = dma.hbm_to_vmem [thread:$0]  %s2928_s2, 16, %s52_s14, [#allocation7]  }
  0x68   :  { %s2323_s30 = smov [#allocation11]   ;;  %s2324_s16 = smov [#allocation14]  }
  0x69   :  { %s73_s12 = sshll.u32 %s2323_s30, 4  ;;  %s95_s17 = sshll.u32 %s2324_s16, 4  ;;  %s74_s12 = int_to_ptr.vmem [resolvable:$true] %s73_s12  ;;  %s96_s17 = int_to_ptr.vmem [resolvable:$true] %s95_s17 }
  0x6a   :  { %s2225_s19 = scalar_lea.hbm %s2930_s4, 16 }
  0x6b   :  { %p2226_p6 = scmp.ne.s32.totalorder %s2930_s4, %s2225_s19  ;;  %p2229_p7 = scmp.lt.u32.totalorder %s2225_s19, %s2930_s4 }
  0x6d   :  { %p2231_p8 = pnand %p2229_p7, %p2226_p6 }
  0x6f   :  { %2234 = shalt.err (!%p2231_p8)
}
  0x70   :  { %s2235_s2 = scalar_lea.vmem %s74_s12, 16  ;;  %s2239_s14 = scalar_lea.vmem %s74_s12, 32 }
  0x71   :  { %p2236_p9 = scmp.ne.s32.totalorder %s74_s12, %s2235_s2  ;;  %p2240_p10 = scmp.lt.s32.totalorder %s74_s12, %s74_s12 }
  0x72   :  { %p2241_p11 = scmp.lt.s32.totalorder %s2239_s14, %s2235_s2 }
  0x74   :  { %p2242_p12 = por %p2241_p11, %p2240_p10 }
  0x76   :  { %p2243_p13 = pnand %p2242_p12, %p2236_p9 }
  0x78   :  { %2246 = shalt.err (!%p2243_p13)
}
  0x79   :  { %76 = dma.hbm_to_vmem [thread:$0]  %s2930_s4, 16, %s74_s12, [#allocation10]  }
  0x7a   :  { %s2247_s25 = scalar_lea.hbm %s2932_s6, 16 }
  0x7b   :  { %p2248_p0 = scmp.ne.s32.totalorder %s2932_s6, %s2247_s25  ;;  %p2251_p1 = scmp.lt.u32.totalorder %s2247_s25, %s2932_s6 }
  0x7d   :  { %p2253_p2 = pnand %p2251_p1, %p2248_p0 }
  0x7f   :  { %2256 = shalt.err (!%p2253_p2)
}
  0x80   :  { %s2257_s15 = scalar_lea.vmem %s96_s17, 16  ;;  %s2261_s0 = scalar_lea.vmem %s96_s17, 32 }
  0x81   :  { %p2258_p3 = scmp.ne.s32.totalorder %s96_s17, %s2257_s15  ;;  %p2262_p4 = scmp.lt.s32.totalorder %s96_s17, %s96_s17 }
  0x82   :  { %p2263_p5 = scmp.lt.s32.totalorder %s2261_s0, %s2257_s15 }
  0x84   :  { %p2264_p6 = por %p2263_p5, %p2262_p4 }
  0x86   :  { %p2265_p7 = pnand %p2264_p6, %p2258_p3 }
  0x88   :  { %2268 = shalt.err (!%p2265_p7)
}
  0x89   :  { %98 = dma.hbm_to_vmem [thread:$0]  %s2932_s6, 16, %s96_s17, [#allocation13]  }
  0x8a   :  { %s2325_s30 = smov [#allocation17]   ;;  %s2269_s13 = scalar_lea.hbm %s2934_s8, 320 }
  0x8b   :  { %s116_s12 = sshll.u32 %s2325_s30, 4  ;;  %p2270_p8 = scmp.ne.s32.totalorder %s2934_s8, %s2269_s13  ;;  %s117_s12 = int_to_ptr.vmem [resolvable:$true] %s116_s12 }
  0x8c   :  { %p2273_p9 = scmp.lt.u32.totalorder %s2269_s13, %s2934_s8 }
  0x8e   :  { %p2275_p10 = pnand %p2273_p9, %p2270_p8 }
  0x90   :  { %2278 = shalt.err (!%p2275_p10)
}
  0x91   :  { %s2279_s20 = scalar_lea.vmem %s117_s12, 320  ;;  %p2284_p12 = scmp.lt.s32.totalorder %s117_s12, %s117_s12 }
  0x92   :  { %p2280_p11 = scmp.ne.s32.totalorder %s117_s12, %s2279_s20  ;;  %p2285_p13 = scmp.lt.s32.totalorder %s2279_s20, %s2279_s20 }
  0x94   :  { %p2286_p0 = por %p2285_p13, %p2284_p12 }
  0x96   :  { %p2287_p1 = pnand %p2286_p0, %p2280_p11 }
  0x98   :  { %2290 = shalt.err (!%p2287_p1)
}
  0x99   :  { %s2326_s6 = smov 80   ;;  %s2327_s17 = smov 5  }
  0x9a   :  { %122 = dma.hbm_to_vmem [thread:$0]  %s2934_s8, 320, %s117_s12, [#allocation16], %s2326_s6, %s2326_s6, %s2327_s17  }
  0x9b   :  { %s2291_s18 = scalar_lea.hbm %s2935_s9, 16 }
  0x9c   :  { %p2292_p2 = scmp.ne.s32.totalorder %s2935_s9, %s2291_s18  ;;  %p2295_p3 = scmp.lt.u32.totalorder %s2291_s18, %s2935_s9 }
  0x9e   :  { %p2297_p4 = pnand %p2295_p3, %p2292_p2 }
  0xa0   :  { %2300 = shalt.err (!%p2297_p4)
}
  0xa1   :  { %s2328_s27 = smov [#allocation18]  }
  0xa2   :  { %130 = dma.hbm_to_smem %s2935_s9, 16, %s2328_s27, [#allocation5]  }
  0xa3   :  { %2301 = dma.done.wait [#allocation4], 32  }
  0xa4   :  { %2302 = vsyncadd [#allocation4], 4294967264 }
  0xa5   :  { %2303 = dma.done.wait [#allocation7], 272  }
  0xa6   :  { %2304 = vsyncadd [#allocation7], 4294967024 }
  0xa7   :  { %2305 = dma.done.wait [#allocation10], 528  }
  0xa8   :  { %2306 = vsyncadd [#allocation10], 4294966768 }
  0xa9   :  { %2307 = dma.done.wait [#allocation13], 528  }
  0xaa   :  { %2308 = vsyncadd [#allocation13], 4294966768 }
  0xab   :  { %2309 = dma.done.wait [#allocation16], 10560  }
  0xac   :  { %2310 = vsyncadd [#allocation16], 4294956736 }
  0xad   :  { %2311 = dma.done.wait [#allocation5], 16  }
  0xae   :  { %2312 = vsyncadd [#allocation5], 4294967280 }
  0xaf   :  { %163 = sfence }
  0xb0   :  { %v165_v0 = vld [vmem:[#allocation6] sm:$0xff]  ;;  %v166_v1 = vld [vmem:[#allocation6 + $0x8] sm:$0xff]  ;;  %v2329_v2 = vmov 0.0|0.0   ;;  %vm2330_vm0 = vmmov 0   ;;  %v2331_v4 = vmov 0.0   ;;  %v249_v5 = vld [vmem:[#allocation9] sm:$0xff] }
  0xb1   :  { %1970 = vmatprep.subr.bf16.mxu0 %v2329_v2  ;;  %v1971_v3 = vpack.c.bf16 %v166_v1, %v165_v0  ;;  %1901 = vmatprep.mubr.msk.f32.mxu0 %vm2330_vm0, %v2331_v4  ;;  %v250_v6 = vld [vmem:[#allocation9 + $0x8] sm:$0xff]  ;;  %vm174_vm1 = vcmask 130048   ;;  %v251_v9 = vld [vmem:[#allocation9 + $0x10] sm:$0xff]  ;;  %v252_v10 = vld [vmem:[#allocation9 + $0x18] sm:$0xff]  ;;  %vm260_vm2 = vcmask 261120   ;;  %s1486_s8 = sld [smem:[#allocation18]] }
  0xb2   :  { %1973 = vmatprep.subr.bf16.mxu1 %v2329_v2  ;;  %v1974_v7 = vpack.c.bf16 %v250_v6, %v249_v5  ;;  %1912 = vmatprep.mubr.msk.f32.mxu1 %vm2330_vm0, %v2331_v4  ;;  %v164_v8 = vld [vmem:[#allocation3] sm:$0x3]  ;;  %v1977_v11 = vpack.c.bf16 %v252_v10, %v251_v9  ;;  %v335_v12 = vld [vmem:[#allocation12] sm:$0xff]  ;;  %v1825_v15 = vld [vmem:[#allocation8] ss:$0 sm:$0xff]  ;;  %s1846_s9 = sld [smem:[#allocation18 + $0x1]] }
  0xb3   :  { %1972 = vmatpush3.bf16.msra.mxu0 %v1971_v3  ;;  %v336_v13 = vld [vmem:[#allocation12 + $0x8] sm:$0xff]  ;;  %v337_v20 = vld [vmem:[#allocation12 + $0x10] sm:$0xff]  ;;  %v338_v21 = vld [vmem:[#allocation12 + $0x18] sm:$0xff]  ;;  %s1852_s0 = sld [smem:[#allocation18 + $0x2]]  ;;  %s1858_s4 = sld [smem:[#allocation18 + $0x3]]  ;;  %vm1567_vm3 = vcmask 713728  }
  0xb4   :  { %1975 = vmatpush3.bf16.msra.mxu1 %v1974_v7  ;;  %1979 = vmatprep.subr.bf16.mxu0 %v2329_v2  ;;  %v1980_v14 = vpack.c.bf16 %v336_v13, %v335_v12  ;;  %v1983_v22 = vpack.c.bf16 %v338_v21, %v337_v20  ;;  %v421_v23 = vld [vmem:[#allocation15 + $0x8] sm:$0xff]  ;;  %v426_v24 = vld [vmem:[#allocation15 + $0x30] sm:$0xff]  ;;  %v423_v25 = vld [vmem:[#allocation15 + $0x18] sm:$0xff]  ;;  %s1843_s29 = sld [smem:[#allocation18 + $0x4]]  ;;  %s1847_s30 = sld [smem:[#allocation18 + $0x5]] }
  0xb5   :  { %1976 = vmatprep.subr.bf16.mxu1 %v2329_v2  ;;  %v1985_v26 = vpack.c.bf16 %v426_v24, %v421_v23  ;;  %v428_v27 = vld [vmem:[#allocation15 + $0x40] sm:$0xff]  ;;  %v425_v29 = vld [vmem:[#allocation15 + $0x28] sm:$0xff]  ;;  %v1827_v32 = vld [vmem:[#allocation11] ss:$0 sm:$0xff]  ;;  %s1853_s12 = sld [smem:[#allocation18 + $0x6]]  ;;  %s1859_s16 = sld [smem:[#allocation18 + $0x7]] }
  0xb6   :  { %1902 = vmatmul.mubr.msk.f32.vlgmr.msra.gmra.mrb[0].mxu0 %vm174_vm1, %v164_v8  ;;  %v420_v28 = vld [vmem:[#allocation15] sm:$0xff]  ;;  %v1993_v30 = vpack.c.bf16 %v428_v27, %v423_v25  ;;  %v422_v33 = vld [vmem:[#allocation15 + $0x10] sm:$0xff]  ;;  %v427_v34 = vld [vmem:[#allocation15 + $0x38] sm:$0xff]  ;;  %s2605_s3 = sld [smem:[#allocation18 + $0x8]]  ;;  %s2609_s13 = sld [smem:[#allocation18 + $0x9]] }
  0xb7   :  { %1923 = vmatprep.mubr.msk.f32.mxu0 %vm2330_vm0, %v2331_v4  ;;  %1981 = vmatpush3.bf16.msra.mxu0 %v1980_v14  ;;  %v1987_v31 = vpack.c.bf16 %v425_v29, %v420_v28  ;;  %v1995_v38 = vpack.c.bf16 %v427_v34, %v422_v33  ;;  %v431_v40 = vld [vmem:[#allocation15 + $0x58] sm:$0xff]  ;;  %v436_v41 = vld [vmem:[#allocation15 + $0x80] sm:$0xff]  ;;  %v433_v42 = vld [vmem:[#allocation15 + $0x68] sm:$0xff]  ;;  %s2611_s19 = sld [smem:[#allocation18 + $0xa]]  ;;  %s2616_s21 = sld [smem:[#allocation18 + $0xb]] }
  0xb8   :  { %1978 = vmatpush3.bf16.msra.mxu1 %v1977_v11  ;;  %1982 = vmatprep.subr.bf16.mxu0 %v2329_v2  ;;  %v1989_v43 = vpack.c.bf16 %v436_v41, %v431_v40  ;;  %v438_v44 = vld [vmem:[#allocation15 + $0x90] sm:$0xff]  ;;  %v435_v46 = vld [vmem:[#allocation15 + $0x78] sm:$0xff]  ;;  %v432_v49 = vld [vmem:[#allocation15 + $0x60] sm:$0xff]  ;;  %s2759_s22 = sld [smem:[#allocation18 + $0xc]]  ;;  %s2765_s7 = sld [smem:[#allocation18 + $0xd]] }
  0xb9   :  { %1986 = vmatprep.subr.bf16.mxu1 %v1985_v26  ;;  %v430_v45 = vld [vmem:[#allocation15 + $0x50] sm:$0xff]  ;;  %v1997_v47 = vpack.c.bf16 %v438_v44, %v433_v42  ;;  %v437_v50 = vld [vmem:[#allocation15 + $0x88] sm:$0xff]  ;;  %v1829_v55 = vld [vmem:[#allocation14] ss:$0 sm:$0xff]  ;;  %s2767_s20 = sld [smem:[#allocation18 + $0xe]]  ;;  %s2773_s6 = sld [smem:[#allocation18 + $0xf]] }
  0xba   :  { %v1991_v48 = vpack.c.bf16 %v435_v46, %v430_v45  ;;  %v1999_v51 = vpack.c.bf16 %v437_v50, %v432_v49  ;;  %v689_v52 = vld [vmem:[#allocation15 + $0xa8] sm:$0xff]  ;;  %v694_v53 = vld [vmem:[#allocation15 + $0xd0] sm:$0xff]  ;;  %v424_v56 = vld [vmem:[#allocation15 + $0x20] sm:$0xff] }
  0xbb   :  { %1984 = vmatpush3.bf16.msra.mxu0 %v1983_v22  ;;  %v2007_v54 = vpack.c.bf16 %v694_v53, %v689_v52  ;;  %v429_v57 = vld [vmem:[#allocation15 + $0x48] sm:$0xff]  ;;  %v688_v58 = vld [vmem:[#allocation15 + $0xa0] sm:$0xff]  ;;  %v699_v61 = vld [vmem:[#allocation15 + $0xf8] sm:$0xff] }
  0xbc   :  { %1994 = vmatprep.subr.bf16.mxu0 %v1993_v30  ;;  %v693_v59 = vld [vmem:[#allocation15 + $0xc8] sm:$0xff]  ;;  %v704_v62 = vld [vmem:[#allocation15 + $0x120] sm:$0xff]  ;;  %v2002_v1 = vpack.c.bf16 %v429_v57, %v424_v56  ;;  %v434_v5 = vld [vmem:[#allocation15 + $0x70] sm:$0xff] }
  0xbd   :  { %v2009_v3 = vpack.c.bf16 %v693_v59, %v688_v58  ;;  %v2011_v7 = vpack.c.bf16 %v704_v62, %v699_v61  ;;  %v439_v8 = vld [vmem:[#allocation15 + $0x98] sm:$0xff]  ;;  %v698_v9 = vld [vmem:[#allocation15 + $0xf0] sm:$0xff]  ;;  %v696_v12 = vld [vmem:[#allocation15 + $0xe0] sm:$0xff] }
  0xbe   :  { %v703_v10 = vld [vmem:[#allocation15 + $0x118] sm:$0xff]  ;;  %v2005_v13 = vpack.c.bf16 %v439_v8, %v434_v5  ;;  %v701_v20 = vld [vmem:[#allocation15 + $0x108] sm:$0xff]  ;;  %v706_v21 = vld [vmem:[#allocation15 + $0x130] sm:$0xff] }
  0xbf   :  { %v691_v11 = vld [vmem:[#allocation15 + $0xb8] sm:$0xff]  ;;  %v2013_v14 = vpack.c.bf16 %v703_v10, %v698_v9  ;;  %v700_v24 = vld [vmem:[#allocation15 + $0x100] sm:$0xff]  ;;  %v705_v25 = vld [vmem:[#allocation15 + $0x128] sm:$0xff]  ;;  %v2019_v26 = vpack.c.bf16 %v706_v21, %v701_v20 }
  0xc0   :  { %v702_v27 = vld [vmem:[#allocation15 + $0x110] sm:$0xff]  ;;  %v707_v28 = vld [vmem:[#allocation15 + $0x138] sm:$0xff]  ;;  %v955_v29 = vld [vmem:[#allocation15 + $0x148] sm:$0xff]  ;;  %v2021_v33 = vpack.c.bf16 %v705_v25, %v700_v24 }
  0xc1   :  { %v960_v30 = vld [vmem:[#allocation15 + $0x170] sm:$0xff]  ;;  %v2027_v34 = vpack.c.bf16 %v707_v28, %v702_v27  ;;  %v961_v40 = vld [vmem:[#allocation15 + $0x178] sm:$0xff]  ;;  %v970_v42 = vld [vmem:[#allocation15 + $0x1c0] sm:$0xff] }
  0xc2   :  { %v965_v41 = vld [vmem:[#allocation15 + $0x198] sm:$0xff]  ;;  %v972_v44 = vld [vmem:[#allocation15 + $0x1d0] sm:$0xff]  ;;  %v971_v52 = vld [vmem:[#allocation15 + $0x1c8] sm:$0xff] }
  0xc3   :  { %v969_v50 = vld [vmem:[#allocation15 + $0x1b8] sm:$0xff]  ;;  %v1221_v53 = vld [vmem:[#allocation15 + $0x1e8] sm:$0xff]  ;;  %v958_v57 = vld [vmem:[#allocation15 + $0x160] sm:$0xff] }
  0xc4   :  { %v963_v59 = vld [vmem:[#allocation15 + $0x188] sm:$0xff]  ;;  %v1231_v62 = vld [vmem:[#allocation15 + $0x238] sm:$0xff]  ;;  %v1230_v8 = vld [vmem:[#allocation15 + $0x230] sm:$0xff] }
  0xc5   :  { %v1225_v61 = vld [vmem:[#allocation15 + $0x208] sm:$0xff]  ;;  %v1235_v9 = vld [vmem:[#allocation15 + $0x258] sm:$0xff]  ;;  %v1238_v20 = vld [vmem:[#allocation15 + $0x270] sm:$0xff] }
  0xc6   :  { %v1223_v10 = vld [vmem:[#allocation15 + $0x1f8] sm:$0xff]  ;;  %v1237_v25 = vld [vmem:[#allocation15 + $0x268] sm:$0xff] }
  0xc7   :  { %v1239_v27 = vld [vmem:[#allocation15 + $0x278] sm:$0xff] }
 0x189   :  { %v244_v16 = vpop.f32.mrb[0].mxu0 }
 0x18a   :  { %v245_v17 = vadd.f32 %v1825_v15, %v244_v16  ;;  %v1903_v18 = vpop.f32.mrb[1].mxu0  ;;  %v690_v15 = vld [vmem:[#allocation15 + $0xb0] sm:$0xff]  ;;  %v2015_v16 = vpack.c.bf16 %v696_v12, %v691_v11  ;;  %v1228_v11 = vld [vmem:[#allocation15 + $0x220] sm:$0xff] }
 0x18b   :  { %v692_v18 = vld [vmem:[#allocation15 + $0xc0] sm:$0xff] }
 0x18c   :  { %v248_v19 = vmax.f32 %v245_v17, 0.0  ;;  %v695_v17 = vld [vmem:[#allocation15 + $0xd8] sm:$0xff] }
 0x18d   :  { %v2017_v22 = vpack.c.bf16 %v695_v17, %v690_v15  ;;  %v2059_v15 = vpack.c.bf16 %v1228_v11, %v1223_v10  ;;  %v1224_v17 = vld [vmem:[#allocation15 + $0x200] sm:$0xff] }
 0x18e   :  { %1913 = vmatmul.mubr.msk.f32.vlgmr.msra.gmra.mrb[0].mxu1 %vm260_vm2, %v248_v19  ;;  %v697_v19 = vld [vmem:[#allocation15 + $0xe8] sm:$0xff] }
 0x18f   :  { %534 = vmatprep.mubr.f32.mxu1 %v2331_v4  ;;  %1988 = vmatpush1.bf16.msra.mxu1 %v1987_v31  ;;  %v2024_v23 = vpack.c.bf16 %v697_v19, %v692_v18  ;;  %v957_v31 = vld [vmem:[#allocation15 + $0x158] sm:$0xff]  ;;  %v1229_v18 = vld [vmem:[#allocation15 + $0x228] sm:$0xff] }
 0x190   :  { %1990 = vmatprep.subr.bf16.mxu1 %v1989_v43  ;;  %v967_v43 = vld [vmem:[#allocation15 + $0x1a8] sm:$0xff] }
 0x191   :  { %v2041_v49 = vpack.c.bf16 %v972_v44, %v967_v43  ;;  %v1233_v19 = vld [vmem:[#allocation15 + $0x248] sm:$0xff] }
 0x192   :  { %v2063_v24 = vpack.c.bf16 %v1238_v20, %v1233_v19  ;;  %v2665_v19 = vstv %s2616_s21 }
 0x193   :  { %1992 = vmatpush1.bf16.msra.mxu1 %v1991_v48  ;;  %v2033_v48 = vpack.c.bf16 %v970_v42, %v965_v41  ;;  %v2613_v41 = vstv %s1486_s8 }
 0x194   :  { %2001 = vmatprep.subr.bf16.mxu1 %v2329_v2 }
 0x261   :  { %v330_v35 = vpop.f32.mrb[0].mxu1 }
 0x262   :  { %v331_v36 = vadd.f32 %v1827_v32, %v330_v35  ;;  %v1914_v37 = vpop.f32.mrb[1].mxu1  ;;  %v962_v32 = vld [vmem:[#allocation15 + $0x180] sm:$0xff] }
 0x263   :  { %v954_v35 = vld [vmem:[#allocation15 + $0x140] sm:$0xff]  ;;  %v2029_v37 = vpack.c.bf16 %v960_v30, %v955_v29  ;;  %v442_v30 = vlaneseq }
 0x264   :  { %v334_v39 = vmax.f32 %v331_v36, 0.0  ;;  %v959_v36 = vld [vmem:[#allocation15 + $0x168] sm:$0xff] }
 0x265   :  { %v2031_v45 = vpack.c.bf16 %v959_v36, %v954_v35  ;;  %v2603_v36 = vld [vmem:[#allocation17 + $0x5] sm:$0x1f] }
 0x266   :  { %1924 = vmatmul.mubr.msk.f32.vlgmr.msra.gmra.mrb[2].mxu0 %vm260_vm2, %v334_v39  ;;  %v956_v39 = vld [vmem:[#allocation15 + $0x150] sm:$0xff] }
 0x267   :  { %1996 = vmatpush1.bf16.msra.mxu0 %v1995_v38  ;;  %605 = vmatprep.mubr.f32.mxu0 %v2331_v4  ;;  %v2037_v38 = vpack.c.bf16 %v962_v32, %v957_v31  ;;  %v2039_v46 = vpack.c.bf16 %v961_v40, %v956_v39  ;;  %v2585_v31 = vshrl.u32 %v442_v30, 7 }
 0x268   :  { %1998 = vmatprep.subr.bf16.mxu0 %v1997_v47  ;;  %v964_v47 = vld [vmem:[#allocation15 + $0x190] sm:$0xff] }
 0x269   :  { %v2588_v32 = vsub.s32 0, %v2585_v31  ;;  %v2601_v35 = vsub.s32 4, %v2585_v31 }
 0x26b   :  { %2000 = vmatpush1.bf16.msra.mxu0 %v1999_v51  ;;  %v966_v51 = vld [vmem:[#allocation15 + $0x1a0] sm:$0xff] }
 0x26c   :  { %2008 = vmatprep.subr.bf16.mxu0 %v2007_v54  ;;  %v1226_v54 = vld [vmem:[#allocation15 + $0x210] sm:$0xff]  ;;  %v2043_v56 = vpack.c.bf16 %v971_v52, %v966_v51  ;;  %v2629_v52 = vld [vmem:[#allocation17 + $0xa] sm:$0x1f] }
 0x26d   :  { %v2051_v58 = vpack.c.bf16 %v1226_v54, %v1221_v53  ;;  %v996_v20 = vrot.slane %v2629_v52, %v2601_v35 }
 0x339   :  { %v415_v60 = vpop.f32.mrb[2].mxu0 }
 0x33a   :  { %v416_v63 = vadd.f32 %v1829_v55, %v415_v60  ;;  %v1925_v0 = vpop.f32.mrb[3].mxu0  ;;  %v2035_v55 = vpack.c.bf16 %v969_v50, %v964_v47  ;;  %v1220_v60 = vld [vmem:[#allocation15 + $0x1e0] sm:$0xff]  ;;  %v2620_v47 = vstv %s1852_s0  ;;  %v714_v50 = vrot.slane %v2603_v36, %v2588_v32 }
 0x33b   :  { %v2046_v0 = vpack.c.bf16 %v963_v59, %v958_v57  ;;  %v2635_v57 = vstv %s1853_s12 }
 0x33c   :  { %v2538_v6 = vmax.f32 %v416_v63, 0.0  ;;  %v1236_v63 = vld [vmem:[#allocation15 + $0x260] sm:$0xff] }
 0x33d   :  { %v2055_v5 = vpack.c.bf16 %v1236_v63, %v1231_v62 }
 0x33e   :  { %1831 = vmatmul.mubr.msk.f32.vlgmr.msra.gmra.mrb[2].mxu1 %vm260_vm2, %v2538_v6  ;;  %1832 = vmatmul.mubr.msk.f32.vlgmr.msra.gmra.mrb[4].mxu0 %vm260_vm2, %v2538_v6 }
 0x33f   :  { %2003 = vmatpush3.bf16.msra.mxu1 %v2002_v1  ;;  %2010 = vmatpush1.bf16.msra.mxu0 %v2009_v3  ;;  %v2053_v1 = vpack.c.bf16 %v1225_v61, %v1220_v60  ;;  %v968_v3 = vld [vmem:[#allocation15 + $0x1b0] sm:$0xff]  ;;  %v730_v60 = vrot.slane %v2603_v36, %v2601_v35 }
 0x340   :  { %2004 = vmatprep.subr.bf16.mxu1 %v2329_v2  ;;  %2012 = vmatprep.subr.bf16.mxu0 %v2011_v7  ;;  %v973_v7 = vld [vmem:[#allocation15 + $0x1d8] sm:$0xff] }
 0x341   :  { %1934 = vmatprep.mubr.msk.f32.mxu1 %vm2330_vm0, %v2331_v4  ;;  %800 = vmatprep.mubr.f32.mxu0 %v2331_v4  ;;  %v2049_v12 = vpack.c.bf16 %v973_v7, %v968_v3 }
 0x343   :  { %2006 = vmatpush3.bf16.msra.mxu1 %v2005_v13  ;;  %2014 = vmatpush1.bf16.msra.mxu0 %v2013_v14  ;;  %v2057_v13 = vpack.c.bf16 %v1235_v9, %v1230_v8  ;;  %v1222_v14 = vld [vmem:[#allocation15 + $0x1f0] sm:$0xff] }
 0x344   :  { %2016 = vmatprep.subr.bf16.mxu1 %v2015_v16  ;;  %2023 = vmatprep.subr.bf16.mxu0 %v2329_v2  ;;  %v1227_v16 = vld [vmem:[#allocation15 + $0x218] sm:$0xff]  ;;  %v2656_v8 = vld [vmem:[#allocation17 + $0xf] sm:$0x1f] }
 0x345   :  { %v2061_v21 = vpack.c.bf16 %v1227_v16, %v1222_v14  ;;  %v2662_v14 = vstv %s2611_s19 }
 0x346   :  { %1935 = vmatmul.mubr.msk.f32.vlgmr.msra.gmra.mrb[4].mxu1 %vm260_vm2, %v2538_v6  ;;  %1834 = vmatmul.mubr.msk.f32.vlgmr.msra.gmra.mrb[6].mxu0 %vm260_vm2, %v2538_v6 }
 0x347   :  { %2018 = vmatpush1.bf16.msra.mxu1 %v2017_v22  ;;  %2025 = vmatpush3.bf16.msra.mxu0 %v2024_v23  ;;  %v2068_v22 = vpack.c.bf16 %v1229_v18, %v1224_v17  ;;  %v1232_v23 = vld [vmem:[#allocation15 + $0x240] sm:$0xff] }
 0x348   :  { %2020 = vmatprep.subr.bf16.mxu1 %v2019_v26  ;;  %2026 = vmatprep.subr.bf16.mxu0 %v2329_v2  ;;  %v1234_v26 = vld [vmem:[#allocation15 + $0x250] sm:$0xff]  ;;  %v2065_v28 = vpack.c.bf16 %v1237_v25, %v1232_v23 }
 0x349   :  { %871 = vmatprep.mubr.f32.mxu1 %v2331_v4  ;;  %1945 = vmatprep.mubr.msk.f32.mxu0 %vm2330_vm0, %v2331_v4  ;;  %v2071_v29 = vpack.c.bf16 %v1239_v27, %v1234_v26 }
 0x34b   :  { %2022 = vmatpush1.bf16.msra.mxu1 %v2021_v33  ;;  %2028 = vmatpush3.bf16.msra.mxu0 %v2027_v34  ;;  %v2594_v33 = vsub.s32 1, %v2585_v31 }
 0x34c   :  { %2030 = vmatprep.subr.bf16.mxu1 %v2029_v37  ;;  %2038 = vmatprep.subr.bf16.mxu0 %v2037_v38 }
 0x34d   :  { %v718_v51 = vrot.slane %v2603_v36, %v2594_v33 }
 0x34e   :  { %1835 = vmatmul.mubr.msk.f32.vlgmr.msra.gmra.mrb[6].mxu1 %vm260_vm2, %v2538_v6  ;;  %1946 = vmatmul.mubr.msk.f32.vlgmr.msra.gmra.mrb[8].mxu0 %vm260_vm2, %v2538_v6 }
 0x34f   :  { %2032 = vmatpush1.bf16.msra.mxu1 %v2031_v45  ;;  %2040 = vmatpush1.bf16.msra.mxu0 %v2039_v46  ;;  %v2618_v46 = vstv %s1846_s9 }
 0x350   :  { %2034 = vmatprep.subr.bf16.mxu1 %v2033_v48  ;;  %2042 = vmatprep.subr.bf16.mxu0 %v2041_v49  ;;  %v2622_v48 = vstv %s1858_s4 }
 0x351   :  { %1066 = vmatprep.mubr.f32.mxu1 %v2331_v4  ;;  %1137 = vmatprep.mubr.f32.mxu0 %v2331_v4 }
 0x353   :  { %2036 = vmatpush1.bf16.msra.mxu1 %v2035_v55  ;;  %2044 = vmatpush1.bf16.msra.mxu0 %v2043_v56  ;;  %v2631_v55 = vstv %s1843_s29  ;;  %v2633_v56 = vstv %s1847_s30 }
 0x354   :  { %2045 = vmatprep.subr.bf16.mxu1 %v2329_v2  ;;  %2052 = vmatprep.subr.bf16.mxu0 %v2051_v58  ;;  %v2637_v58 = vstv %s1859_s16 }
 0x356   :  { %1837 = vmatmul.mubr.msk.f32.vlgmr.msra.gmra.mrb[8].mxu1 %vm260_vm2, %v2538_v6  ;;  %1838 = vmatmul.mubr.msk.f32.vlgmr.msra.gmra.mrb[10].mxu0 %vm260_vm2, %v2538_v6 }
 0x357   :  { %2047 = vmatpush3.bf16.msra.mxu1 %v2046_v0  ;;  %2054 = vmatpush1.bf16.msra.mxu0 %v2053_v1  ;;  %v980_v0 = vrot.slane %v2629_v52, %v2588_v32  ;;  %v2648_v1 = vstv %s2605_s3 }
 0x358   :  { %2048 = vmatprep.subr.bf16.mxu1 %v2329_v2  ;;  %2056 = vmatprep.subr.bf16.mxu0 %v2055_v5  ;;  %v984_v5 = vrot.slane %v2629_v52, %v2594_v33 }
 0x359   :  { %1956 = vmatprep.mubr.msk.f32.mxu1 %vm2330_vm0, %v2331_v4  ;;  %1332 = vmatprep.mubr.f32.mxu0 %v2331_v4 }
 0x35b   :  { %2050 = vmatpush3.bf16.msra.mxu1 %v2049_v12  ;;  %2058 = vmatpush1.bf16.msra.mxu0 %v2057_v13  ;;  %v2659_v13 = vstv %s2609_s13 }
 0x35c   :  { %2060 = vmatprep.subr.bf16.mxu1 %v2059_v15  ;;  %2067 = vmatprep.subr.bf16.mxu0 %v2329_v2 }
 0x35e   :  { %1957 = vmatmul.mubr.msk.f32.vlgmr.msra.gmra.mrb[10].mxu1 %vm260_vm2, %v2538_v6  ;;  %1840 = vmatmul.mubr.msk.f32.vlgmr.msra.gmra.mrb[12].mxu0 %vm260_vm2, %v2538_v6 }
 0x35f   :  { %2062 = vmatpush1.bf16.msra.mxu1 %v2061_v21  ;;  %2069 = vmatpush3.bf16.msra.mxu0 %v2068_v22 }
 0x360   :  { %2064 = vmatprep.subr.bf16.mxu1 %v2063_v24  ;;  %2070 = vmatprep.subr.bf16.mxu0 %v2329_v2  ;;  %v440_v2 = vld [vmem:[#allocation17] sm:$0x1f] }
 0x361   :  { %1403 = vmatprep.mubr.f32.mxu1 %v2331_v4  ;;  %1967 = vmatprep.mubr.msk.f32.mxu0 %vm2330_vm0, %v2331_v4  ;;  %v2591_v4 = vsub.s32 2, %v2585_v31  ;;  %v445_v34 = vrot.slane %v440_v2, %v2588_v32  ;;  %v449_v40 = vrot.slane %v440_v2, %v2594_v33  ;;  %v461_v49 = vrot.slane %v440_v2, %v2601_v35 }
 0x363   :  { %2066 = vmatpush1.bf16.msra.mxu1 %v2065_v28  ;;  %2072 = vmatpush3.bf16.msra.mxu0 %v2071_v29  ;;  %v453_v38 = vrot.slane %v440_v2, %v2591_v4  ;;  %v722_v59 = vrot.slane %v2603_v36, %v2591_v4  ;;  %v988_v3 = vrot.slane %v2629_v52, %v2591_v4 }
 0x366   :  { %1841 = vmatmul.mubr.msk.f32.vlgmr.msra.gmra.mrb[12].mxu1 %vm260_vm2, %v2538_v6  ;;  %1968 = vmatmul.mubr.msk.f32.vlgmr.msra.gmra.mrb[14].mxu0 %vm260_vm2, %v2538_v6  ;;  %v2597_v6 = vsub.s32 3, %v2585_v31 }
 0x368   :  { %v457_v43 = vrot.slane %v440_v2, %v2597_v6  ;;  %v726_v63 = vrot.slane %v2603_v36, %v2597_v6  ;;  %v992_v7 = vrot.slane %v2629_v52, %v2597_v6 }
 0x411   :  { %v536_v37 = vpop.f32.mrb[2].mxu1  ;;  %v607_v39 = vpop.f32.mrb[4].mxu0 }
 0x412   :  { %v538_v42 = vpop.f32.mrb[3].mxu1  ;;  %v609_v44 = vpop.f32.mrb[5].mxu0  ;;  %v537_v45 = vadd.f32 %v536_v37, %v445_v34  ;;  %v608_v53 = vadd.f32 %v607_v39, %v453_v38 }
 0x413   :  { %v539_v54 = vadd.f32 %v538_v42, %v449_v40  ;;  %v610_v62 = vadd.f32 %v609_v44, %v457_v43 }
 0x414   :  { %v682_v61 = vmax.f32 %v537_v45, 0.0  ;;  %v684_v9 = vmax.f32 %v608_v53, 0.0 }
 0x415   :  { %v683_v10 = vmax.f32 %v539_v54, 0.0  ;;  %v685_v22 = vmax.f32 %v610_v62, 0.0 }
 0x416   :  { %v1488_v21 = vmul.f32 %v2613_v41, %v682_v61  ;;  %v1571_v25 = vmul.f32 %v2618_v46, %v682_v61  ;;  %v1653_v26 = vmul.f32 %v2620_v47, %v682_v61  ;;  %v1735_v27 = vmul.f32 %v2622_v48, %v682_v61 }
 0x417   :  { %v1490_v29 = vmul.f32 %v2613_v41, %v684_v9  ;;  %v1573_v30 = vmul.f32 %v2618_v46, %v684_v9  ;;  %v1489_v2 = vmul.f32 %v2613_v41, %v683_v10  ;;  %v1572_v36 = vmul.f32 %v2618_v46, %v683_v10 }
 0x418   :  { %v1654_v37 = vmul.f32 %v2620_v47, %v683_v10  ;;  %v1736_v38 = vmul.f32 %v2622_v48, %v683_v10 }
 0x419   :  { %v678_v11 = vpop.f32.mrb[4].mxu1  ;;  %v802_v12 = vpop.f32.mrb[6].mxu0 }
 0x41a   :  { %v679_v15 = vadd.f32 %v678_v11, %v461_v49  ;;  %v803_v16 = vadd.f32 %v802_v12, %v714_v50  ;;  %v1936_v17 = vpop.f32.mrb[5].mxu1  ;;  %v804_v18 = vpop.f32.mrb[7].mxu0 }
 0x41b   :  { %v805_v23 = vadd.f32 %v804_v18, %v718_v51 }
 0x41c   :  { %v948_v28 = vmax.f32 %v803_v16, 0.0  ;;  %v686_v39 = vmax.f32 %v679_v15, 0.0 }
 0x41d   :  { %v949_v34 = vmax.f32 %v805_v23, 0.0 }
 0x41e   :  { %v1495_v40 = vmul.f32 %v2631_v55, %v948_v28  ;;  %v1578_v42 = vmul.f32 %v2633_v56, %v948_v28  ;;  %v1660_v43 = vmul.f32 %v2635_v57, %v948_v28  ;;  %v1742_v44 = vmul.f32 %v2637_v58, %v948_v28 }
 0x41f   :  { %v1496_v45 = vmul.f32 %v2631_v55, %v949_v34  ;;  %v1579_v49 = vmul.f32 %v2633_v56, %v949_v34  ;;  %v1661_v50 = vmul.f32 %v2635_v57, %v949_v34  ;;  %v1743_v51 = vmul.f32 %v2637_v58, %v949_v34 }
 0x420   :  { %v2689_v53 = vadd.f32 %v1495_v40, %v1488_v21  ;;  %v2691_v54 = vadd.f32 %v1578_v42, %v1571_v25  ;;  %v2693_v61 = vadd.f32 %v1660_v43, %v1653_v26  ;;  %v2695_v62 = vadd.f32 %v1742_v44, %v1735_v27 }
 0x421   :  { %v873_v10 = vpop.f32.mrb[6].mxu1  ;;  %v944_v11 = vpop.f32.mrb[8].mxu0  ;;  %v2697_v12 = vadd.f32 %v1496_v45, %v1489_v2  ;;  %v2699_v15 = vadd.f32 %v1579_v49, %v1572_v36  ;;  %v2701_v16 = vadd.f32 %v1661_v50, %v1654_v37  ;;  %v2703_v17 = vadd.f32 %v1743_v51, %v1736_v38 }
 0x422   :  { %v875_v18 = vpop.f32.mrb[7].mxu1  ;;  %v1947_v23 = vpop.f32.mrb[9].mxu0  ;;  %v1655_v21 = vmul.f32 %v2620_v47, %v684_v9  ;;  %v874_v25 = vadd.f32 %v873_v10, %v722_v59  ;;  %v945_v28 = vadd.f32 %v944_v11, %v730_v60  ;;  %v1737_v27 = vmul.f32 %v2622_v48, %v684_v9 }
 0x423   :  { %v876_v26 = vadd.f32 %v875_v18, %v726_v63  ;;  %v1491_v34 = vmul.f32 %v2613_v41, %v685_v22  ;;  %v1574_v2 = vmul.f32 %v2618_v46, %v685_v22  ;;  %v1656_v36 = vmul.f32 %v2620_v47, %v685_v22 }
 0x424   :  { %v1738_v37 = vmul.f32 %v2622_v48, %v685_v22  ;;  %v1492_v38 = vmul.f32 %v2613_v41, %v686_v39  ;;  %v950_v40 = vmax.f32 %v874_v25, 0.0  ;;  %v952_v42 = vmax.f32 %v945_v28, 0.0 }
 0x425   :  { %v1575_v43 = vmul.f32 %v2618_v46, %v686_v39  ;;  %v1657_v59 = vmul.f32 %v2620_v47, %v686_v39  ;;  %v1739_v60 = vmul.f32 %v2622_v48, %v686_v39  ;;  %v951_v63 = vmax.f32 %v876_v26, 0.0 }
 0x426   :  { %v1497_v9 = vmul.f32 %v2631_v55, %v950_v40  ;;  %v1580_v44 = vmul.f32 %v2633_v56, %v950_v40  ;;  %v1662_v45 = vmul.f32 %v2635_v57, %v950_v40  ;;  %v1744_v49 = vmul.f32 %v2637_v58, %v950_v40 }
 0x427   :  { %v1499_v22 = vmul.f32 %v2631_v55, %v952_v42  ;;  %v1582_v41 = vmul.f32 %v2633_v56, %v952_v42  ;;  %v1664_v50 = vmul.f32 %v2635_v57, %v952_v42  ;;  %v1746_v46 = vmul.f32 %v2637_v58, %v952_v42 }
 0x428   :  { %v1502_v47 = vadd.f32 %v1497_v9, %v1490_v29  ;;  %v1585_v51 = vadd.f32 %v1580_v44, %v1573_v30  ;;  %v1667_v48 = vadd.f32 %v1662_v45, %v1655_v21  ;;  %v1749_v39 = vadd.f32 %v1744_v49, %v1737_v27 }
 0x429   :  { %v1068_v10 = vpop.f32.mrb[8].mxu1  ;;  %v1139_v11 = vpop.f32.mrb[10].mxu0  ;;  %v2723_v18 = vadd.f32 %v1499_v22, %v1492_v38  ;;  %v2725_v23 = vadd.f32 %v1582_v41, %v1575_v43  ;;  %v2727_v25 = vadd.f32 %v1664_v50, %v1657_v59  ;;  %v2729_v28 = vadd.f32 %v1746_v46, %v1739_v60 }
 0x42a   :  { %v1070_v26 = vpop.f32.mrb[9].mxu1  ;;  %v1141_v40 = vpop.f32.mrb[11].mxu0  ;;  %v1498_v24 = vmul.f32 %v2631_v55, %v951_v63  ;;  %v1581_v42 = vmul.f32 %v2633_v56, %v951_v63  ;;  %v1663_v29 = vmul.f32 %v2635_v57, %v951_v63  ;;  %v1745_v30 = vmul.f32 %v2637_v58, %v951_v63 }
 0x42b   :  { %v1069_v21 = vadd.f32 %v1068_v10, %v980_v0  ;;  %v1140_v27 = vadd.f32 %v1139_v11, %v988_v3  ;;  %v1071_v38 = vadd.f32 %v1070_v26, %v984_v5  ;;  %v1142_v55 = vadd.f32 %v1141_v40, %v992_v7 }
 0x42c   :  { %v1503_v56 = vadd.f32 %v1498_v24, %v1491_v34  ;;  %v1586_v57 = vadd.f32 %v1581_v42, %v1574_v2  ;;  %v1668_v43 = vadd.f32 %v1663_v29, %v1656_v36  ;;  %v1750_v58 = vadd.f32 %v1745_v30, %v1738_v37 }
 0x42d   :  { %v1214_v59 = vmax.f32 %v1069_v21, 0.0  ;;  %v1216_v60 = vmax.f32 %v1140_v27, 0.0  ;;  %v1250_v0 = vrot.slane %v2656_v8, %v2594_v33  ;;  %v1254_v3 = vrot.slane %v2656_v8, %v2591_v4 }
 0x42e   :  { %v1215_v63 = vmax.f32 %v1071_v38, 0.0  ;;  %v1217_v9 = vmax.f32 %v1142_v55, 0.0  ;;  %v1262_v5 = vrot.slane %v2656_v8, %v2601_v35  ;;  %v1258_v7 = vrot.slane %v2656_v8, %v2597_v6 }
 0x42f   :  { %v1507_v24 = vmul.f32 %v2648_v1, %v1214_v59  ;;  %v1590_v34 = vmul.f32 %v2659_v13, %v1214_v59  ;;  %v1672_v2 = vmul.f32 %v2662_v14, %v1214_v59  ;;  %v1754_v36 = vmul.f32 %v2665_v19, %v1214_v59 }
 0x430   :  { %v1509_v4 = vmul.f32 %v2648_v1, %v1216_v60  ;;  %v1592_v33 = vmul.f32 %v2659_v13, %v1216_v60  ;;  %v1674_v37 = vmul.f32 %v2662_v14, %v1216_v60  ;;  %v1756_v44 = vmul.f32 %v2665_v19, %v1216_v60 }
 0x431   :  { %v1210_v45 = vpop.f32.mrb[10].mxu1  ;;  %v1334_v6 = vpop.f32.mrb[12].mxu0  ;;  %v1512_v49 = vadd.f32 %v1507_v24, %v2689_v53  ;;  %v1595_v22 = vadd.f32 %v1590_v34, %v2691_v54  ;;  %v1677_v41 = vadd.f32 %v1672_v2, %v2693_v61  ;;  %v1759_v50 = vadd.f32 %v1754_v36, %v2695_v62 }
 0x432   :  { %v1958_v46 = vpop.f32.mrb[11].mxu1  ;;  %v1336_v10 = vpop.f32.mrb[13].mxu0  ;;  %v2775_v11 = vadd.f32 %v1509_v4, %v1502_v47  ;;  %v2777_v26 = vadd.f32 %v1592_v33, %v1585_v51  ;;  %v2779_v40 = vadd.f32 %v1674_v37, %v1667_v48  ;;  %v2781_v42 = vadd.f32 %v1756_v44, %v1749_v39 }
 0x433   :  { %v1508_v53 = vmul.f32 %v2648_v1, %v1215_v63  ;;  %v1591_v54 = vmul.f32 %v2659_v13, %v1215_v63  ;;  %v1673_v61 = vmul.f32 %v2662_v14, %v1215_v63  ;;  %v1755_v62 = vmul.f32 %v2665_v19, %v1215_v63 }
 0x434   :  { %v1510_v29 = vmul.f32 %v2648_v1, %v1217_v9  ;;  %v1593_v30 = vmul.f32 %v2659_v13, %v1217_v9  ;;  %v1675_v47 = vmul.f32 %v2662_v14, %v1217_v9  ;;  %v1757_v51 = vmul.f32 %v2665_v19, %v1217_v9 }
 0x435   :  { %v1513_v48 = vadd.f32 %v1508_v53, %v2697_v12  ;;  %v1596_v39 = vadd.f32 %v1591_v54, %v2699_v15  ;;  %v1678_v21 = vadd.f32 %v1673_v61, %v2701_v16  ;;  %v1760_v27 = vadd.f32 %v1755_v62, %v2703_v17 }
 0x436   :  { %v2795_v38 = vadd.f32 %v1510_v29, %v1503_v56  ;;  %v2797_v55 = vadd.f32 %v1593_v30, %v1586_v57  ;;  %v2799_v59 = vadd.f32 %v1675_v47, %v1668_v43  ;;  %v2801_v60 = vadd.f32 %v1757_v51, %v1750_v58 }
 0x437   :  { %v1211_v63 = vadd.f32 %v1210_v45, %v996_v20  ;;  %v2938_v12 = vrot.slane %v2656_v8, %v2588_v32  ;;  %v1337_v16 = vadd.f32 %v1336_v10, %v1250_v0  ;;  %v2332_v9 = vmov 1983009808  }
 0x438   :  { %v2809_v17 = vunpack.c.l.s4 %v2332_v9  ;;  %v2812_v56 = vstv %s2759_s22  ;;  %v2815_v57 = vstv %s2765_s7  ;;  %v2818_v43 = vstv %s2767_s20 }
 0x439   :  { %v1335_v15 = vadd.f32 %v1334_v6, %v2938_v12  ;;  %v1405_v58 = vpop.f32.mrb[12].mxu1  ;;  %v1476_v24 = vpop.f32.mrb[14].mxu0  ;;  %v1218_v34 = vmax.f32 %v1211_v63, 0.0  ;;  %v2823_v35 = vstv %s2936_s10  ;;  %v2826_v32 = vstv %s2773_s6 }
 0x43a   :  { %v1407_v52 = vpop.f32.mrb[13].mxu1  ;;  %v1969_v8 = vpop.f32.mrb[15].mxu0  ;;  %v1481_v20 = vmax.f32 %v1337_v16, 0.0  ;;  %v1406_v0 = vadd.f32 %v1405_v58, %v1254_v3  ;;  %v1477_v36 = vadd.f32 %v1476_v24, %v1262_v5  ;;  %v1544_v47 = vunpack.c.0.s8 %v2809_v17 }
 0x43b   :  { %v1480_v2 = vmax.f32 %v1335_v15, 0.0  ;;  %v1408_v4 = vadd.f32 %v1407_v52, %v1258_v7  ;;  %v1511_v33 = vmul.f32 %v2648_v1, %v1218_v34  ;;  %v1594_v37 = vmul.f32 %v2659_v13, %v1218_v34 }
 0x43c   :  { %v1676_v44 = vmul.f32 %v2662_v14, %v1218_v34  ;;  %v1758_v45 = vmul.f32 %v2665_v19, %v1218_v34  ;;  %v1520_v61 = vmul.f32 %v2812_v56, %v1481_v20  ;;  %v1603_v62 = vmul.f32 %v2815_v57, %v1481_v20 }
 0x43d   :  { %v1519_v6 = vmul.f32 %v2812_v56, %v1480_v2  ;;  %v1602_v46 = vmul.f32 %v2815_v57, %v1480_v2  ;;  %v1684_v10 = vmul.f32 %v2818_v43, %v1480_v2  ;;  %v1766_v53 = vmul.f32 %v2826_v32, %v1480_v2 }
 0x43e   :  { %v1516_v3 = vadd.f32 %v1511_v33, %v2723_v18  ;;  %v1599_v5 = vadd.f32 %v1594_v37, %v2725_v23  ;;  %v1681_v1 = vadd.f32 %v1676_v44, %v2727_v25  ;;  %v1763_v13 = vadd.f32 %v1758_v45, %v2729_v28 }
 0x43f   :  { %v1524_v7 = vadd.f32 %v1519_v6, %v1512_v49  ;;  %v1607_v14 = vadd.f32 %v1602_v46, %v1595_v22  ;;  %v1689_v54 = vadd.f32 %v1684_v10, %v1677_v41  ;;  %v1771_v19 = vadd.f32 %v1766_v53, %v1759_v50 }
 0x440   :  { %v1685_v29 = vmul.f32 %v2818_v43, %v1481_v20  ;;  %v1767_v30 = vmul.f32 %v2826_v32, %v1481_v20  ;;  %v1525_v49 = vadd.f32 %v1520_v61, %v1513_v48  ;;  %v1608_v22 = vadd.f32 %v1603_v62, %v1596_v39 }
 0x441   :  { %v2845_v18 = vadd.f32 %v2823_v35, %v1524_v7  ;;  %v2848_v23 = vadd.f32 %v1607_v14, %v2823_v35  ;;  %v2851_v25 = vadd.f32 %v1689_v54, %v2823_v35  ;;  %v2854_v28 = vadd.f32 %v1771_v19, %v2823_v35 }
 0x442   :  { %v1690_v41 = vadd.f32 %v1685_v29, %v1678_v21  ;;  %v1772_v50 = vadd.f32 %v1767_v30, %v1760_v27  ;;  %v1482_v51 = vmax.f32 %v1406_v0, 0.0  ;;  %v1484_v63 = vmax.f32 %v1477_v36, 0.0 }
 0x443   :  { %v1483_v12 = vmax.f32 %v1408_v4, 0.0  ;;  %v1531_v15 = vadd.f32 %v2823_v35, %v1525_v49  ;;  %v1613_v16 = vadd.f32 %v1608_v22, %v2823_v35  ;;  %v1547_v36 = vsub.s32 %v1544_v47, %v2585_v31 }
 0x444   :  { %v1695_v9 = vadd.f32 %v1690_v41, %v2823_v35  ;;  %v1777_v58 = vadd.f32 %v1772_v50, %v2823_v35  ;;  %v1521_v24 = vmul.f32 %v2812_v56, %v1482_v51  ;;  %v1604_v48 = vmul.f32 %v2815_v57, %v1482_v51 }
 0x445   :  { %v1686_v39 = vmul.f32 %v2818_v43, %v1482_v51  ;;  %v1768_v21 = vmul.f32 %v2826_v32, %v1482_v51  ;;  %v1540_v27 = vcombine.low %v2845_v18, %v1531_v15  ;;  %v1622_v17 = vcombine.low %v2848_v23, %v1613_v16 }
 0x446   :  { %v1704_v34 = vcombine.low %v2851_v25, %v1695_v9  ;;  %v1786_v2 = vcombine.low %v2854_v28, %v1777_v58  ;;  %v1526_v52 = vadd.f32 %v1521_v24, %v2775_v11  ;;  %v1609_v8 = vadd.f32 %v1604_v48, %v2777_v26 }
 0x447   :  { %v1691_v20 = vadd.f32 %v1686_v39, %v2779_v40  ;;  %v1773_v0 = vadd.f32 %v1768_v21, %v2781_v42  ;;  %v1523_v45 = vmul.f32 %v2812_v56, %v1484_v63  ;;  %v1606_v11 = vmul.f32 %v2815_v57, %v1484_v63 }
 0x448   :  { %v1532_v4 = vadd.f32 %v2823_v35, %v1526_v52  ;;  %v1614_v33 = vadd.f32 %v1609_v8, %v2823_v35  ;;  %v1688_v26 = vmul.f32 %v2818_v43, %v1484_v63  ;;  %v1770_v40 = vmul.f32 %v2826_v32, %v1484_v63 }
 0x449   :  { %v1696_v37 = vadd.f32 %v1691_v20, %v2823_v35  ;;  %v1778_v44 = vadd.f32 %v1773_v0, %v2823_v35  ;;  %v1522_v42 = vmul.f32 %v2812_v56, %v1483_v12  ;;  %v1605_v31 = vmul.f32 %v2815_v57, %v1483_v12 }
 0x44a   :  { %v1687_v6 = vmul.f32 %v2818_v43, %v1483_v12  ;;  %v1769_v46 = vmul.f32 %v2826_v32, %v1483_v12  ;;  %v1528_v10 = vadd.f32 %v1523_v45, %v1516_v3  ;;  %v1611_v53 = vadd.f32 %v1606_v11, %v1599_v5 }
 0x44b   :  { %v1693_v7 = vadd.f32 %v1688_v26, %v1681_v1  ;;  %v1775_v14 = vadd.f32 %v1770_v40, %v1763_v13  ;;  %v1527_v54 = vadd.f32 %v1522_v42, %v2795_v38  ;;  %v1610_v19 = vadd.f32 %v1605_v31, %v2797_v55 }
 0x44c   :  { %v1692_v61 = vadd.f32 %v1687_v6, %v2799_v59  ;;  %v1774_v62 = vadd.f32 %v1769_v46, %v2801_v60  ;;  %v1534_v56 = vadd.f32 %v2823_v35, %v1528_v10  ;;  %v1616_v57 = vadd.f32 %v1611_v53, %v2823_v35 }
 0x44d   :  { %v1698_v43 = vadd.f32 %v1693_v7, %v2823_v35  ;;  %v1780_v32 = vadd.f32 %v1775_v14, %v2823_v35  ;;  %v1533_v3 = vadd.f32 %v2823_v35, %v1527_v54  ;;  %v1615_v5 = vadd.f32 %v1610_v19, %v2823_v35 }
 0x44e   :  { %v1697_v38 = vadd.f32 %v1692_v61, %v2823_v35  ;;  %v1779_v55 = vadd.f32 %v1774_v62, %v2823_v35  ;;  %v1563_v1 = vrot.slane %v1534_v56, %v1547_v36  ;;  %v1645_v59 = vrot.slane %v1616_v57, %v1547_v36 }
 0x44f   :  { %v1727_v13 = vrot.slane %v1698_v43, %v1547_v36  ;;  %v1809_v60 = vrot.slane %v1780_v32, %v1547_v36  ;;  %v1541_v29 = vcombine.low %v1532_v4, %v1533_v3  ;;  %v1623_v30 = vcombine.low %v1614_v33, %v1615_v5 }
 0x450   :  { %v1705_v18 = vcombine.low %v1696_v37, %v1697_v38  ;;  %v1787_v23 = vcombine.low %v1778_v44, %v1779_v55  ;;  %v1548_v25 = vrot.slane %v1540_v27, %v1547_v36  ;;  %v1630_v28 = vrot.slane %v1622_v17, %v1547_v36  ;;  %1568 = vst.msk [vmem:[%s2937_s11 + $0x8] sm:$0x3] %vm1567_vm3, %v1563_v1 }
 0x451   :  { %v1712_v49 = vrot.slane %v1704_v34, %v1547_v36  ;;  %v1794_v22 = vrot.slane %v1786_v2, %v1547_v36  ;;  %1851 = vst.msk [vmem:[%s2937_s11 + $0x12] sm:$0x3] %vm1567_vm3, %v1645_v59  ;;  %1857 = vst.msk [vmem:[%s2937_s11 + $0x1c] sm:$0x3] %vm1567_vm3, %v1727_v13  ;;  %v1555_v35 = vrot.slane %v1541_v29, %v1547_v36 }
 0x452   :  { %1863 = vst.msk [vmem:[%s2937_s11 + $0x26] sm:$0x3] %vm1567_vm3, %v1809_v60  ;;  %v1637_v41 = vrot.slane %v1623_v30, %v1547_v36  ;;  %v1719_v50 = vrot.slane %v1705_v18, %v1547_v36  ;;  %v1801_v47 = vrot.slane %v1787_v23, %v1547_v36 }
 0x453   :  { %v1556_v51 = vcombine.low %v1548_v25, %v1555_v35 }
 0x454   :  { %v1638_v63 = vcombine.low %v1630_v28, %v1637_v41  ;;  %v1720_v12 = vcombine.low %v1712_v49, %v1719_v50  ;;  %v1802_v15 = vcombine.low %v1794_v22, %v1801_v47 }
 0x455   :  { %1566 = vst [vmem:[%s2937_s11] sm:$0xff] %v1556_v51 }
 0x456   :  { %1850 = vst [vmem:[%s2937_s11 + $0xa] sm:$0xff] %v1638_v63  ;;  %1856 = vst [vmem:[%s2937_s11 + $0x14] sm:$0xff] %v1720_v12 }
 0x457   :  { %1862 = vst [vmem:[%s2937_s11 + $0x1e] sm:$0xff] %v1802_v15 }
 0x458   :  { %1819 = vsyncpa [#allocation4], 1 }
 0x459   :  { %1820 = vsyncpa [#allocation7], 1 }
 0x45a   :  { %1821 = vsyncpa [#allocation10], 1 }
 0x45b   :  { %1822 = vsyncpa [#allocation13], 1 }
 0x45c   :  { %1823 = vsyncpa [#allocation16], 1 }
 0x45d   :  { %1824 = vsyncpa [#allocation5], 1 }

</bundles_post_ra>
